<compile_context>
chip_gen: v5e
topology: v5e:2x2
jax: 0.10.0
libtpu: 0.0.40
codegen_flags: <defaults>
</compile_context>

<pallas_src>
import functools

import jax
import jax.numpy as jnp
from jax.experimental import pallas as pl
from jax.experimental.pallas import tpu as pltpu


def lstm_kernel(x_ref,          # [S, B]   time-major input
                wx_ref,         # [1, 4H]  packed input weights  [g|i|f|o]
                wh_ref,         # [H, 4H]  packed hidden weights [g|i|f|o]
                b_ref,          # [1, 4H]  packed biases         [g|i|f|o]
                wph_ref,        # [H, C]
                bp_ref,         # [1, C]
                out_ref,        # [B, C]
                *, seq_length, num_hidden):
    S, B = x_ref.shape
    H = num_hidden

    x_tm = x_ref[...]                          # [S, B]
    w_x = wx_ref[...]                          # [1, 4H]
    w_h = wh_ref[...]                          # [H, 4H]
    b = b_ref[...]                             # [1, 4H]

    # Hoisted input projection + bias: x_proj[t] = x[:, t:t+1] * W_x_cat + b_cat
    # shape [S, B, 4H] = [8, 8, 128]; computed once, off the serial chain.
    x_proj = x_tm[:, :, None] * w_x[None, :, :] + b[None, :, :]

    c = jnp.zeros((B, H), jnp.float32)
    h = jnp.zeros((B, H), jnp.float32)

    # Fully unrolled recurrence (seq_length is a small static int).
    for t in range(seq_length):
        # Single lane-dense MXU matmul per step: [B,H] @ [H,4H] -> [B,4H].
        z = x_proj[t] + jnp.dot(h, w_h, preferred_element_type=jnp.float32)
        g = jnp.tanh(z[:, 0 * H:1 * H])
        i = jax.nn.sigmoid(z[:, 1 * H:2 * H])
        f = jax.nn.sigmoid(z[:, 2 * H:3 * H])
        o = jax.nn.sigmoid(z[:, 3 * H:4 * H])
        c = g * i + c * f
        h = jnp.tanh(c) * o

    # Final projection; output width C=10 < 128 -> one masked store, negligible.
    out_ref[...] = (jnp.dot(h, wph_ref[...], preferred_element_type=jnp.float32)
                    + bp_ref[...])


def lstm_forward(x, params, *, seq_length, num_hidden, num_classes):
    (W_gx, W_gh, b_g,
     W_ix, W_ih, b_i,
     W_fx, W_fh, b_f,
     W_ox, W_oh, b_o,
     W_ph, b_p) = params
    B = x.shape[0]

    # Pack gates along the lane axis -> [H, 4H] = [32, 128] (lane-dense MXU).
    W_x_cat = jnp.concatenate([W_gx, W_ix, W_fx, W_ox], axis=1)   # [1, 4H]
    W_h_cat = jnp.concatenate([W_gh, W_ih, W_fh, W_oh], axis=1)   # [H, 4H]
    b_cat = jnp.concatenate([b_g, b_i, b_f, b_o], axis=1)         # [1, 4H]

    # Time-major input so the kernel indexes the leading (sublane) axis.
    x_tm = x.T                                                    # [S, B]

    vmem = pl.BlockSpec(memory_space=pltpu.MemorySpace.VMEM)
    kernel = functools.partial(lstm_kernel,
                               seq_length=seq_length,
                               num_hidden=num_hidden)
    return pl.pallas_call(
        kernel,
        out_shape=jax.ShapeDtypeStruct((B, num_classes), jnp.float32),
        in_specs=[vmem] * 6,
        out_specs=vmem,
    )(x_tm, W_x_cat, W_h_cat, b_cat, W_ph, b_p)


def xavier_normal(key, shape):
    fan_in, fan_out = shape
    std = (2.0 / (fan_in + fan_out)) ** 0.5
    return std * jax.random.normal(key, shape, dtype=jnp.float32)


def make_params(key, input_dim, num_hidden, num_classes):
    keys = jax.random.split(key, 9)
    W_gx = xavier_normal(keys[0], (input_dim, num_hidden))
    W_gh = xavier_normal(keys[1], (num_hidden, num_hidden))
    b_g = jnp.zeros((1, num_hidden), jnp.float32)
    W_ix = xavier_normal(keys[2], (input_dim, num_hidden))
    W_ih = xavier_normal(keys[3], (num_hidden, num_hidden))
    b_i = jnp.zeros((1, num_hidden), jnp.float32)
    W_fx = xavier_normal(keys[4], (input_dim, num_hidden))
    W_fh = xavier_normal(keys[5], (num_hidden, num_hidden))
    b_f = jnp.ones((1, num_hidden), jnp.float32)   # forget bias = 1, as in the module
    W_ox = xavier_normal(keys[6], (input_dim, num_hidden))
    W_oh = xavier_normal(keys[7], (num_hidden, num_hidden))
    b_o = jnp.zeros((1, num_hidden), jnp.float32)
    W_ph = xavier_normal(keys[8], (num_hidden, num_classes))
    b_p = jnp.zeros((1, num_classes), jnp.float32)
    return (W_gx, W_gh, b_g,
            W_ix, W_ih, b_i,
            W_fx, W_fh, b_f,
            W_ox, W_oh, b_o,
            W_ph, b_p)


def lstm_reference(x, params, seq_length, num_hidden):
    (W_gx, W_gh, b_g, W_ix, W_ih, b_i,
     W_fx, W_fh, b_f, W_ox, W_oh, b_o, W_ph, b_p) = params
    B = x.shape[0]
    c = jnp.zeros((B, num_hidden), jnp.float32)
    h = jnp.zeros((B, num_hidden), jnp.float32)
    for t in range(seq_length):
        x_n = x[:, t:t + 1]
        g = jnp.tanh(x_n @ W_gx + h @ W_gh + b_g)
        i = jax.nn.sigmoid(x_n @ W_ix + h @ W_ih + b_i)
        f = jax.nn.sigmoid(x_n @ W_fx + h @ W_fh + b_f)
        o = jax.nn.sigmoid(x_n @ W_ox + h @ W_oh + b_o)
        c = g * i + c * f
        h = jnp.tanh(c) * o
    return h @ W_ph + b_p


if __name__ == "__main__":
    seq_length = 8
    input_dim = 1          # forward does x[:, [t]] -> [B, 1], so input_dim must be 1
    num_hidden = 32
    num_classes = 10
    batch = 8

    key = jax.random.PRNGKey(0)
    kx, kp = jax.random.split(key)
    x = jax.random.normal(kx, (batch, seq_length), dtype=jnp.float32)
    params = make_params(kp, input_dim, num_hidden, num_classes)

    p = lstm_forward(x, params,
                     seq_length=seq_length,
                     num_hidden=num_hidden,
                     num_classes=num_classes)
    p = jax.block_until_ready(p)

    p_ref = lstm_reference(x, params, seq_length, num_hidden)
    assert p.shape == (batch, num_classes)
    assert jnp.allclose(p, p_ref, atol=1e-5, rtol=1e-5)

    print("KERNEL_OK")
</pallas_src>

<mosaic_0001>
module attributes {stable_mosaic.version = 11 : i64} {
  func.func @lstm_kernel(%arg0: memref<8x8xf32, #tpu.memory_space<vmem>>, %arg1: memref<1x128xf32, #tpu.memory_space<vmem>>, %arg2: memref<32x128xf32, #tpu.memory_space<vmem>>, %arg3: memref<1x128xf32, #tpu.memory_space<vmem>>, %arg4: memref<32x10xf32, #tpu.memory_space<vmem>>, %arg5: memref<1x10xf32, #tpu.memory_space<vmem>>, %arg6: memref<8x10xf32, #tpu.memory_space<vmem>>) attributes {dimension_semantics = [], scalar_prefetch = 0 : i64, scratch_operands = 0 : i64, tpu.core_type = #tpu.core_type<tc>} {
    %c0 = arith.constant 0 : index
    %c0_0 = arith.constant 0 : index
    %0 = vector.load %arg0[%c0, %c0_0] : memref<8x8xf32, #tpu.memory_space<vmem>>, vector<8x8xf32>
    %c0_1 = arith.constant 0 : index
    %c0_2 = arith.constant 0 : index
    %1 = vector.load %arg1[%c0_1, %c0_2] : memref<1x128xf32, #tpu.memory_space<vmem>>, vector<1x128xf32>
    %c0_3 = arith.constant 0 : index
    %c0_4 = arith.constant 0 : index
    %2 = vector.load %arg2[%c0_3, %c0_4] : memref<32x128xf32, #tpu.memory_space<vmem>>, vector<32x128xf32>
    %c0_5 = arith.constant 0 : index
    %c0_6 = arith.constant 0 : index
    %3 = vector.load %arg3[%c0_5, %c0_6] : memref<1x128xf32, #tpu.memory_space<vmem>>, vector<1x128xf32>
    %4 = vector.shape_cast %0 : vector<8x8xf32> to vector<8x8x1xf32>
    %5 = vector.shape_cast %1 : vector<1x128xf32> to vector<1x1x128xf32>
    %6 = vector.broadcast %4 : vector<8x8x1xf32> to vector<8x8x128xf32>
    %7 = vector.broadcast %5 : vector<1x1x128xf32> to vector<8x8x128xf32>
    %8 = arith.mulf %6, %7 : vector<8x8x128xf32>
    %9 = vector.shape_cast %3 : vector<1x128xf32> to vector<1x1x128xf32>
    %10 = vector.broadcast %9 : vector<1x1x128xf32> to vector<8x8x128xf32>
    %11 = arith.addf %8, %10 : vector<8x8x128xf32>
    %cst = arith.constant 0.000000e+00 : f32
    %12 = vector.broadcast %cst : f32 to vector<8x32xf32>
    %cst_7 = arith.constant 0.000000e+00 : f32
    %13 = vector.broadcast %cst_7 : f32 to vector<8x32xf32>
    %14 = vector.extract_strided_slice %11 {offsets = [0, 0, 0], sizes = [1, 8, 128], strides = [1, 1, 1]} : vector<8x8x128xf32> to vector<1x8x128xf32>
    %15 = vector.shape_cast %14 : vector<1x8x128xf32> to vector<8x128xf32>
    %cst_8 = arith.constant dense<0.000000e+00> : vector<8x128xf32>
    %16 = tpu.matmul %13, %2, %cst_8 {dimension_numbers = #tpu.dot_dimension_numbers<[1], [0], [0], [1], [0, 0, 1, 1], [], []>} : vector<8x32xf32>, vector<32x128xf32>, vector<8x128xf32> -> vector<8x128xf32>
    %17 = arith.addf %15, %16 : vector<8x128xf32>
    %18 = vector.extract_strided_slice %17 {offsets = [0, 0], sizes = [8, 32], strides = [1, 1]} : vector<8x128xf32> to vector<8x32xf32>
    %19 = math.tanh %18 : vector<8x32xf32>
    %20 = vector.extract_strided_slice %17 {offsets = [0, 32], sizes = [8, 32], strides = [1, 1]} : vector<8x128xf32> to vector<8x32xf32>
    %21 = arith.negf %20 : vector<8x32xf32>
    %22 = math.exp %21 : vector<8x32xf32>
    %cst_9 = arith.constant 1.000000e+00 : f32
    %23 = vector.broadcast %cst_9 : f32 to vector<8x32xf32>
    %24 = arith.addf %23, %22 : vector<8x32xf32>
    %25 = arith.divf %23, %24 : vector<8x32xf32>
    %26 = vector.extract_strided_slice %17 {offsets = [0, 64], sizes = [8, 32], strides = [1, 1]} : vector<8x128xf32> to vector<8x32xf32>
    %27 = arith.negf %26 : vector<8x32xf32>
    %28 = math.exp %27 : vector<8x32xf32>
    %cst_10 = arith.constant 1.000000e+00 : f32
    %29 = vector.broadcast %cst_10 : f32 to vector<8x32xf32>
    %30 = arith.addf %29, %28 : vector<8x32xf32>
    %31 = arith.divf %29, %30 : vector<8x32xf32>
    %32 = vector.extract_strided_slice %17 {offsets = [0, 96], sizes = [8, 32], strides = [1, 1]} : vector<8x128xf32> to vector<8x32xf32>
    %33 = arith.negf %32 : vector<8x32xf32>
    %34 = math.exp %33 : vector<8x32xf32>
    %cst_11 = arith.constant 1.000000e+00 : f32
    %35 = vector.broadcast %cst_11 : f32 to vector<8x32xf32>
    %36 = arith.addf %35, %34 : vector<8x32xf32>
    %37 = arith.divf %35, %36 : vector<8x32xf32>
    %38 = arith.mulf %19, %25 : vector<8x32xf32>
    %39 = arith.mulf %12, %31 : vector<8x32xf32>
    %40 = arith.addf %38, %39 : vector<8x32xf32>
    %41 = math.tanh %40 : vector<8x32xf32>
    %42 = arith.mulf %41, %37 : vector<8x32xf32>
    %43 = vector.extract_strided_slice %11 {offsets = [1, 0, 0], sizes = [1, 8, 128], strides = [1, 1, 1]} : vector<8x8x128xf32> to vector<1x8x128xf32>
    %44 = vector.shape_cast %43 : vector<1x8x128xf32> to vector<8x128xf32>
    %cst_12 = arith.constant dense<0.000000e+00> : vector<8x128xf32>
    %45 = tpu.matmul %42, %2, %cst_12 {dimension_numbers = #tpu.dot_dimension_numbers<[1], [0], [0], [1], [0, 0, 1, 1], [], []>} : vector<8x32xf32>, vector<32x128xf32>, vector<8x128xf32> -> vector<8x128xf32>
    %46 = arith.addf %44, %45 : vector<8x128xf32>
    %47 = vector.extract_strided_slice %46 {offsets = [0, 0], sizes = [8, 32], strides = [1, 1]} : vector<8x128xf32> to vector<8x32xf32>
    %48 = math.tanh %47 : vector<8x32xf32>
    %49 = vector.extract_strided_slice %46 {offsets = [0, 32], sizes = [8, 32], strides = [1, 1]} : vector<8x128xf32> to vector<8x32xf32>
    %50 = arith.negf %49 : vector<8x32xf32>
    %51 = math.exp %50 : vector<8x32xf32>
    %cst_13 = arith.constant 1.000000e+00 : f32
    %52 = vector.broadcast %cst_13 : f32 to vector<8x32xf32>
    %53 = arith.addf %52, %51 : vector<8x32xf32>
    %54 = arith.divf %52, %53 : vector<8x32xf32>
    %55 = vector.extract_strided_slice %46 {offsets = [0, 64], sizes = [8, 32], strides = [1, 1]} : vector<8x128xf32> to vector<8x32xf32>
    %56 = arith.negf %55 : vector<8x32xf32>
    %57 = math.exp %56 : vector<8x32xf32>
    %cst_14 = arith.constant 1.000000e+00 : f32
    %58 = vector.broadcast %cst_14 : f32 to vector<8x32xf32>
    %59 = arith.addf %58, %57 : vector<8x32xf32>
    %60 = arith.divf %58, %59 : vector<8x32xf32>
    %61 = vector.extract_strided_slice %46 {offsets = [0, 96], sizes = [8, 32], strides = [1, 1]} : vector<8x128xf32> to vector<8x32xf32>
    %62 = arith.negf %61 : vector<8x32xf32>
    %63 = math.exp %62 : vector<8x32xf32>
    %cst_15 = arith.constant 1.000000e+00 : f32
    %64 = vector.broadcast %cst_15 : f32 to vector<8x32xf32>
    %65 = arith.addf %64, %63 : vector<8x32xf32>
    %66 = arith.divf %64, %65 : vector<8x32xf32>
    %67 = arith.mulf %48, %54 : vector<8x32xf32>
    %68 = arith.mulf %40, %60 : vector<8x32xf32>
    %69 = arith.addf %67, %68 : vector<8x32xf32>
    %70 = math.tanh %69 : vector<8x32xf32>
    %71 = arith.mulf %70, %66 : vector<8x32xf32>
    %72 = vector.extract_strided_slice %11 {offsets = [2, 0, 0], sizes = [1, 8, 128], strides = [1, 1, 1]} : vector<8x8x128xf32> to vector<1x8x128xf32>
    %73 = vector.shape_cast %72 : vector<1x8x128xf32> to vector<8x128xf32>
    %cst_16 = arith.constant dense<0.000000e+00> : vector<8x128xf32>
    %74 = tpu.matmul %71, %2, %cst_16 {dimension_numbers = #tpu.dot_dimension_numbers<[1], [0], [0], [1], [0, 0, 1, 1], [], []>} : vector<8x32xf32>, vector<32x128xf32>, vector<8x128xf32> -> vector<8x128xf32>
    %75 = arith.addf %73, %74 : vector<8x128xf32>
    %76 = vector.extract_strided_slice %75 {offsets = [0, 0], sizes = [8, 32], strides = [1, 1]} : vector<8x128xf32> to vector<8x32xf32>
    %77 = math.tanh %76 : vector<8x32xf32>
    %78 = vector.extract_strided_slice %75 {offsets = [0, 32], sizes = [8, 32], strides = [1, 1]} : vector<8x128xf32> to vector<8x32xf32>
    %79 = arith.negf %78 : vector<8x32xf32>
    %80 = math.exp %79 : vector<8x32xf32>
    %cst_17 = arith.constant 1.000000e+00 : f32
    %81 = vector.broadcast %cst_17 : f32 to vector<8x32xf32>
    %82 = arith.addf %81, %80 : vector<8x32xf32>
    %83 = arith.divf %81, %82 : vector<8x32xf32>
    %84 = vector.extract_strided_slice %75 {offsets = [0, 64], sizes = [8, 32], strides = [1, 1]} : vector<8x128xf32> to vector<8x32xf32>
    %85 = arith.negf %84 : vector<8x32xf32>
    %86 = math.exp %85 : vector<8x32xf32>
    %cst_18 = arith.constant 1.000000e+00 : f32
    %87 = vector.broadcast %cst_18 : f32 to vector<8x32xf32>
    %88 = arith.addf %87, %86 : vector<8x32xf32>
    %89 = arith.divf %87, %88 : vector<8x32xf32>
    %90 = vector.extract_strided_slice %75 {offsets = [0, 96], sizes = [8, 32], strides = [1, 1]} : vector<8x128xf32> to vector<8x32xf32>
    %91 = arith.negf %90 : vector<8x32xf32>
    %92 = math.exp %91 : vector<8x32xf32>
    %cst_19 = arith.constant 1.000000e+00 : f32
    %93 = vector.broadcast %cst_19 : f32 to vector<8x32xf32>
    %94 = arith.addf %93, %92 : vector<8x32xf32>
    %95 = arith.divf %93, %94 : vector<8x32xf32>
    %96 = arith.mulf %77, %83 : vector<8x32xf32>
    %97 = arith.mulf %69, %89 : vector<8x32xf32>
    %98 = arith.addf %96, %97 : vector<8x32xf32>
    %99 = math.tanh %98 : vector<8x32xf32>
    %100 = arith.mulf %99, %95 : vector<8x32xf32>
    %101 = vector.extract_strided_slice %11 {offsets = [3, 0, 0], sizes = [1, 8, 128], strides = [1, 1, 1]} : vector<8x8x128xf32> to vector<1x8x128xf32>
    %102 = vector.shape_cast %101 : vector<1x8x128xf32> to vector<8x128xf32>
    %cst_20 = arith.constant dense<0.000000e+00> : vector<8x128xf32>
    %103 = tpu.matmul %100, %2, %cst_20 {dimension_numbers = #tpu.dot_dimension_numbers<[1], [0], [0], [1], [0, 0, 1, 1], [], []>} : vector<8x32xf32>, vector<32x128xf32>, vector<8x128xf32> -> vector<8x128xf32>
    %104 = arith.addf %102, %103 : vector<8x128xf32>
    %105 = vector.extract_strided_slice %104 {offsets = [0, 0], sizes = [8, 32], strides = [1, 1]} : vector<8x128xf32> to vector<8x32xf32>
    %106 = math.tanh %105 : vector<8x32xf32>
    %107 = vector.extract_strided_slice %104 {offsets = [0, 32], sizes = [8, 32], strides = [1, 1]} : vector<8x128xf32> to vector<8x32xf32>
    %108 = arith.negf %107 : vector<8x32xf32>
    %109 = math.exp %108 : vector<8x32xf32>
    %cst_21 = arith.constant 1.000000e+00 : f32
    %110 = vector.broadcast %cst_21 : f32 to vector<8x32xf32>
    %111 = arith.addf %110, %109 : vector<8x32xf32>
    %112 = arith.divf %110, %111 : vector<8x32xf32>
    %113 = vector.extract_strided_slice %104 {offsets = [0, 64], sizes = [8, 32], strides = [1, 1]} : vector<8x128xf32> to vector<8x32xf32>
    %114 = arith.negf %113 : vector<8x32xf32>
    %115 = math.exp %114 : vector<8x32xf32>
    %cst_22 = arith.constant 1.000000e+00 : f32
    %116 = vector.broadcast %cst_22 : f32 to vector<8x32xf32>
    %117 = arith.addf %116, %115 : vector<8x32xf32>
    %118 = arith.divf %116, %117 : vector<8x32xf32>
    %119 = vector.extract_strided_slice %104 {offsets = [0, 96], sizes = [8, 32], strides = [1, 1]} : vector<8x128xf32> to vector<8x32xf32>
    %120 = arith.negf %119 : vector<8x32xf32>
    %121 = math.exp %120 : vector<8x32xf32>
    %cst_23 = arith.constant 1.000000e+00 : f32
    %122 = vector.broadcast %cst_23 : f32 to vector<8x32xf32>
    %123 = arith.addf %122, %121 : vector<8x32xf32>
    %124 = arith.divf %122, %123 : vector<8x32xf32>
    %125 = arith.mulf %106, %112 : vector<8x32xf32>
    %126 = arith.mulf %98, %118 : vector<8x32xf32>
    %127 = arith.addf %125, %126 : vector<8x32xf32>
    %128 = math.tanh %127 : vector<8x32xf32>
    %129 = arith.mulf %128, %124 : vector<8x32xf32>
    %130 = vector.extract_strided_slice %11 {offsets = [4, 0, 0], sizes = [1, 8, 128], strides = [1, 1, 1]} : vector<8x8x128xf32> to vector<1x8x128xf32>
    %131 = vector.shape_cast %130 : vector<1x8x128xf32> to vector<8x128xf32>
    %cst_24 = arith.constant dense<0.000000e+00> : vector<8x128xf32>
    %132 = tpu.matmul %129, %2, %cst_24 {dimension_numbers = #tpu.dot_dimension_numbers<[1], [0], [0], [1], [0, 0, 1, 1], [], []>} : vector<8x32xf32>, vector<32x128xf32>, vector<8x128xf32> -> vector<8x128xf32>
    %133 = arith.addf %131, %132 : vector<8x128xf32>
    %134 = vector.extract_strided_slice %133 {offsets = [0, 0], sizes = [8, 32], strides = [1, 1]} : vector<8x128xf32> to vector<8x32xf32>
    %135 = math.tanh %134 : vector<8x32xf32>
    %136 = vector.extract_strided_slice %133 {offsets = [0, 32], sizes = [8, 32], strides = [1, 1]} : vector<8x128xf32> to vector<8x32xf32>
    %137 = arith.negf %136 : vector<8x32xf32>
    %138 = math.exp %137 : vector<8x32xf32>
    %cst_25 = arith.constant 1.000000e+00 : f32
    %139 = vector.broadcast %cst_25 : f32 to vector<8x32xf32>
    %140 = arith.addf %139, %138 : vector<8x32xf32>
    %141 = arith.divf %139, %140 : vector<8x32xf32>
    %142 = vector.extract_strided_slice %133 {offsets = [0, 64], sizes = [8, 32], strides = [1, 1]} : vector<8x128xf32> to vector<8x32xf32>
    %143 = arith.negf %142 : vector<8x32xf32>
    %144 = math.exp %143 : vector<8x32xf32>
    %cst_26 = arith.constant 1.000000e+00 : f32
    %145 = vector.broadcast %cst_26 : f32 to vector<8x32xf32>
    %146 = arith.addf %145, %144 : vector<8x32xf32>
    %147 = arith.divf %145, %146 : vector<8x32xf32>
    %148 = vector.extract_strided_slice %133 {offsets = [0, 96], sizes = [8, 32], strides = [1, 1]} : vector<8x128xf32> to vector<8x32xf32>
    %149 = arith.negf %148 : vector<8x32xf32>
    %150 = math.exp %149 : vector<8x32xf32>
    %cst_27 = arith.constant 1.000000e+00 : f32
    %151 = vector.broadcast %cst_27 : f32 to vector<8x32xf32>
    %152 = arith.addf %151, %150 : vector<8x32xf32>
    %153 = arith.divf %151, %152 : vector<8x32xf32>
    %154 = arith.mulf %135, %141 : vector<8x32xf32>
    %155 = arith.mulf %127, %147 : vector<8x32xf32>
    %156 = arith.addf %154, %155 : vector<8x32xf32>
    %157 = math.tanh %156 : vector<8x32xf32>
    %158 = arith.mulf %157, %153 : vector<8x32xf32>
    %159 = vector.extract_strided_slice %11 {offsets = [5, 0, 0], sizes = [1, 8, 128], strides = [1, 1, 1]} : vector<8x8x128xf32> to vector<1x8x128xf32>
    %160 = vector.shape_cast %159 : vector<1x8x128xf32> to vector<8x128xf32>
    %cst_28 = arith.constant dense<0.000000e+00> : vector<8x128xf32>
    %161 = tpu.matmul %158, %2, %cst_28 {dimension_numbers = #tpu.dot_dimension_numbers<[1], [0], [0], [1], [0, 0, 1, 1], [], []>} : vector<8x32xf32>, vector<32x128xf32>, vector<8x128xf32> -> vector<8x128xf32>
    %162 = arith.addf %160, %161 : vector<8x128xf32>
    %163 = vector.extract_strided_slice %162 {offsets = [0, 0], sizes = [8, 32], strides = [1, 1]} : vector<8x128xf32> to vector<8x32xf32>
    %164 = math.tanh %163 : vector<8x32xf32>
    %165 = vector.extract_strided_slice %162 {offsets = [0, 32], sizes = [8, 32], strides = [1, 1]} : vector<8x128xf32> to vector<8x32xf32>
    %166 = arith.negf %165 : vector<8x32xf32>
    %167 = math.exp %166 : vector<8x32xf32>
    %cst_29 = arith.constant 1.000000e+00 : f32
    %168 = vector.broadcast %cst_29 : f32 to vector<8x32xf32>
    %169 = arith.addf %168, %167 : vector<8x32xf32>
    %170 = arith.divf %168, %169 : vector<8x32xf32>
    %171 = vector.extract_strided_slice %162 {offsets = [0, 64], sizes = [8, 32], strides = [1, 1]} : vector<8x128xf32> to vector<8x32xf32>
    %172 = arith.negf %171 : vector<8x32xf32>
    %173 = math.exp %172 : vector<8x32xf32>
    %cst_30 = arith.constant 1.000000e+00 : f32
    %174 = vector.broadcast %cst_30 : f32 to vector<8x32xf32>
    %175 = arith.addf %174, %173 : vector<8x32xf32>
    %176 = arith.divf %174, %175 : vector<8x32xf32>
    %177 = vector.extract_strided_slice %162 {offsets = [0, 96], sizes = [8, 32], strides = [1, 1]} : vector<8x128xf32> to vector<8x32xf32>
    %178 = arith.negf %177 : vector<8x32xf32>
    %179 = math.exp %178 : vector<8x32xf32>
    %cst_31 = arith.constant 1.000000e+00 : f32
    %180 = vector.broadcast %cst_31 : f32 to vector<8x32xf32>
    %181 = arith.addf %180, %179 : vector<8x32xf32>
    %182 = arith.divf %180, %181 : vector<8x32xf32>
    %183 = arith.mulf %164, %170 : vector<8x32xf32>
    %184 = arith.mulf %156, %176 : vector<8x32xf32>
    %185 = arith.addf %183, %184 : vector<8x32xf32>
    %186 = math.tanh %185 : vector<8x32xf32>
    %187 = arith.mulf %186, %182 : vector<8x32xf32>
    %188 = vector.extract_strided_slice %11 {offsets = [6, 0, 0], sizes = [1, 8, 128], strides = [1, 1, 1]} : vector<8x8x128xf32> to vector<1x8x128xf32>
    %189 = vector.shape_cast %188 : vector<1x8x128xf32> to vector<8x128xf32>
    %cst_32 = arith.constant dense<0.000000e+00> : vector<8x128xf32>
    %190 = tpu.matmul %187, %2, %cst_32 {dimension_numbers = #tpu.dot_dimension_numbers<[1], [0], [0], [1], [0, 0, 1, 1], [], []>} : vector<8x32xf32>, vector<32x128xf32>, vector<8x128xf32> -> vector<8x128xf32>
    %191 = arith.addf %189, %190 : vector<8x128xf32>
    %192 = vector.extract_strided_slice %191 {offsets = [0, 0], sizes = [8, 32], strides = [1, 1]} : vector<8x128xf32> to vector<8x32xf32>
    %193 = math.tanh %192 : vector<8x32xf32>
    %194 = vector.extract_strided_slice %191 {offsets = [0, 32], sizes = [8, 32], strides = [1, 1]} : vector<8x128xf32> to vector<8x32xf32>
    %195 = arith.negf %194 : vector<8x32xf32>
    %196 = math.exp %195 : vector<8x32xf32>
    %cst_33 = arith.constant 1.000000e+00 : f32
    %197 = vector.broadcast %cst_33 : f32 to vector<8x32xf32>
    %198 = arith.addf %197, %196 : vector<8x32xf32>
    %199 = arith.divf %197, %198 : vector<8x32xf32>
    %200 = vector.extract_strided_slice %191 {offsets = [0, 64], sizes = [8, 32], strides = [1, 1]} : vector<8x128xf32> to vector<8x32xf32>
    %201 = arith.negf %200 : vector<8x32xf32>
    %202 = math.exp %201 : vector<8x32xf32>
    %cst_34 = arith.constant 1.000000e+00 : f32
    %203 = vector.broadcast %cst_34 : f32 to vector<8x32xf32>
    %204 = arith.addf %203, %202 : vector<8x32xf32>
    %205 = arith.divf %203, %204 : vector<8x32xf32>
    %206 = vector.extract_strided_slice %191 {offsets = [0, 96], sizes = [8, 32], strides = [1, 1]} : vector<8x128xf32> to vector<8x32xf32>
    %207 = arith.negf %206 : vector<8x32xf32>
    %208 = math.exp %207 : vector<8x32xf32>
    %cst_35 = arith.constant 1.000000e+00 : f32
    %209 = vector.broadcast %cst_35 : f32 to vector<8x32xf32>
    %210 = arith.addf %209, %208 : vector<8x32xf32>
    %211 = arith.divf %209, %210 : vector<8x32xf32>
    %212 = arith.mulf %193, %199 : vector<8x32xf32>
    %213 = arith.mulf %185, %205 : vector<8x32xf32>
    %214 = arith.addf %212, %213 : vector<8x32xf32>
    %215 = math.tanh %214 : vector<8x32xf32>
    %216 = arith.mulf %215, %211 : vector<8x32xf32>
    %217 = vector.extract_strided_slice %11 {offsets = [7, 0, 0], sizes = [1, 8, 128], strides = [1, 1, 1]} : vector<8x8x128xf32> to vector<1x8x128xf32>
    %218 = vector.shape_cast %217 : vector<1x8x128xf32> to vector<8x128xf32>
    %cst_36 = arith.constant dense<0.000000e+00> : vector<8x128xf32>
    %219 = tpu.matmul %216, %2, %cst_36 {dimension_numbers = #tpu.dot_dimension_numbers<[1], [0], [0], [1], [0, 0, 1, 1], [], []>} : vector<8x32xf32>, vector<32x128xf32>, vector<8x128xf32> -> vector<8x128xf32>
    %220 = arith.addf %218, %219 : vector<8x128xf32>
    %221 = vector.extract_strided_slice %220 {offsets = [0, 0], sizes = [8, 32], strides = [1, 1]} : vector<8x128xf32> to vector<8x32xf32>
    %222 = math.tanh %221 : vector<8x32xf32>
    %223 = vector.extract_strided_slice %220 {offsets = [0, 32], sizes = [8, 32], strides = [1, 1]} : vector<8x128xf32> to vector<8x32xf32>
    %224 = arith.negf %223 : vector<8x32xf32>
    %225 = math.exp %224 : vector<8x32xf32>
    %cst_37 = arith.constant 1.000000e+00 : f32
    %226 = vector.broadcast %cst_37 : f32 to vector<8x32xf32>
    %227 = arith.addf %226, %225 : vector<8x32xf32>
    %228 = arith.divf %226, %227 : vector<8x32xf32>
    %229 = vector.extract_strided_slice %220 {offsets = [0, 64], sizes = [8, 32], strides = [1, 1]} : vector<8x128xf32> to vector<8x32xf32>
    %230 = arith.negf %229 : vector<8x32xf32>
    %231 = math.exp %230 : vector<8x32xf32>
    %cst_38 = arith.constant 1.000000e+00 : f32
    %232 = vector.broadcast %cst_38 : f32 to vector<8x32xf32>
    %233 = arith.addf %232, %231 : vector<8x32xf32>
    %234 = arith.divf %232, %233 : vector<8x32xf32>
    %235 = vector.extract_strided_slice %220 {offsets = [0, 96], sizes = [8, 32], strides = [1, 1]} : vector<8x128xf32> to vector<8x32xf32>
    %236 = arith.negf %235 : vector<8x32xf32>
    %237 = math.exp %236 : vector<8x32xf32>
    %cst_39 = arith.constant 1.000000e+00 : f32
    %238 = vector.broadcast %cst_39 : f32 to vector<8x32xf32>
    %239 = arith.addf %238, %237 : vector<8x32xf32>
    %240 = arith.divf %238, %239 : vector<8x32xf32>
    %241 = arith.mulf %222, %228 : vector<8x32xf32>
    %242 = arith.mulf %214, %234 : vector<8x32xf32>
    %243 = arith.addf %241, %242 : vector<8x32xf32>
    %244 = math.tanh %243 : vector<8x32xf32>
    %245 = arith.mulf %244, %240 : vector<8x32xf32>
    %c0_40 = arith.constant 0 : index
    %c0_41 = arith.constant 0 : index
    %246 = vector.load %arg4[%c0_40, %c0_41] : memref<32x10xf32, #tpu.memory_space<vmem>>, vector<32x10xf32>
    %cst_42 = arith.constant dense<0.000000e+00> : vector<8x10xf32>
    %247 = tpu.matmul %245, %246, %cst_42 {dimension_numbers = #tpu.dot_dimension_numbers<[1], [0], [0], [1], [0, 0, 1, 1], [], []>} : vector<8x32xf32>, vector<32x10xf32>, vector<8x10xf32> -> vector<8x10xf32>
    %c0_43 = arith.constant 0 : index
    %c0_44 = arith.constant 0 : index
    %248 = vector.load %arg5[%c0_43, %c0_44] : memref<1x10xf32, #tpu.memory_space<vmem>>, vector<1x10xf32>
    %249 = vector.broadcast %248 : vector<1x10xf32> to vector<8x10xf32>
    %250 = arith.addf %247, %249 : vector<8x10xf32>
    %c0_45 = arith.constant 0 : index
    %c0_46 = arith.constant 0 : index
    %251 = vector.load %arg6[%c0_45, %c0_46] : memref<8x10xf32, #tpu.memory_space<vmem>>, vector<8x10xf32>
    tpu.vector_store %arg6[%c0_45, %c0_46], %250 {strides = array<i32>} : memref<8x10xf32, #tpu.memory_space<vmem>>, vector<8x10xf32>,
    return
  }
}

</mosaic_0001>

<bundles_post_ra>
// kernel: tpu_custom_call.1
= control target key start
LH: loop header
LB: loop body
LE: loop exit
PB: predicated region body
PF: predicated region fallthrough
CT: control target
= control target key end

     0   :  { %v32_v2 = vlaneseq  ;;  %s890_s0 = inlined_call_operand.vmem [shape: f32[8,8], index: 0, kind: input, shape index: {}]   ;;  %s891_s1 = inlined_call_operand.vmem [shape: f32[1,128], index: 1, kind: input, shape index: {}]   ;;  %s892_s2 = inlined_call_operand.vmem [shape: f32[32,128], index: 2, kind: input, shape index: {}]   ;;  %s893_s3 = inlined_call_operand.vmem [shape: f32[1,128], index: 3, kind: input, shape index: {}]   ;;  %s894_s4 = inlined_call_operand.vmem [shape: f32[32,10], index: 4, kind: input, shape index: {}]   ;;  %s895_s5 = inlined_call_operand.vmem [shape: f32[1,10], index: 5, kind: input, shape index: {}]   ;;  %s896_s6 = inlined_call_operand.hbm [shape: f32[8,10], index: 6, kind: output, shape index: {}]  }
   0x1   :  { %v29_v0 = vld [vmem:[%s892_s2 + $0x18] sm:$0xff]  ;;  %v28_v1 = vld [vmem:[%s892_s2 + $0x10] sm:$0xff]  ;;  %v27_v3 = vld [vmem:[%s892_s2 + $0x8] sm:$0xff] }
   0x2   :  { %125 = vmatpush.msra.mxu0 %v29_v0  ;;  %185 = vmatpush.msra.mxu1 %v29_v0  ;;  %v33_v4 = vshrl.u32 %v32_v2, 7 }
   0x3   :  { %244 = vmatpush.msra.mxu2 %v29_v0  ;;  %303 = vmatpush.msra.mxu3 %v29_v0 }
   0x4   :  { %126 = vmatpush.msra.mxu0 %v28_v1  ;;  %186 = vmatpush.msra.mxu1 %v28_v1 }
   0x5   :  { %11 = vsyncpa [#allocation3], 0  ;;  %653 = vset.pattern.permute.xlu0 %v33_v4  ;;  %v26_v5 = vld [vmem:[%s892_s2] sm:$0xff]  ;;  %654 = vset.pattern.permute.xlu2 %v33_v4  ;;  %v749_v7 = vmov 0.0   ;;  %s752_s9 = smov 32   ;;  %vm109_vm4 = vcmask 261120  }
   0x6   :  { %127 = vmatpush.msra.mxu0 %v27_v3  ;;  %v804_v6 = vld [vmem:[%s890_s0] sm:$0xff]  ;;  %187 = vmatpush.msra.mxu1 %v27_v3  ;;  %s753_s20 = smov [#allocation2]   ;;  %s623_s23 = sshll.u32 %s896_s6, 4  ;;  %s624_s23 = int_to_ptr.hbm [resolvable:$true] %s623_s23 }
   0x7   :  { %245 = vmatpush.msra.mxu2 %v28_v1  ;;  %304 = vmatpush.msra.mxu3 %v28_v1  ;;  %v31_v8 = vperm.slane %v804_v6, 0  ;;  %v810_v9 = vld [vmem:[%s891_s1] ss:$0 sm:$0xff]  ;;  %s750_s1 = smov 96   ;;  %v38_v30 = vperm.slane %v804_v6, 1  ;;  %v45_v57 = vperm.slane %v804_v6, 2 }
   0x8   :  { %128 = vmatpush.msra.mxu0 %v26_v5  ;;  %188 = vmatpush.msra.mxu1 %v26_v5  ;;  %v815_v11 = vld [vmem:[%s893_s3] ss:$0 sm:$0xff]  ;;  %s751_s3 = smov 64  }
   0x9   :  { %129 = vmatmul.f32.vlgmr.msra.gmra.mxu0 %v749_v7  ;;  %246 = vmatpush.msra.mxu2 %v27_v3 }
   0xa   :  { %305 = vmatpush.msra.mxu3 %v27_v3  ;;  %362 = vmatpush.msrb.mxu0 %v29_v0 }
   0xb   :  { %247 = vmatpush.msra.mxu2 %v26_v5  ;;  %655 = vset.pattern.permute.xlu1 %v33_v4 }
   0xc   :  { %306 = vmatpush.msra.mxu3 %v26_v5  ;;  %363 = vmatpush.msrb.mxu0 %v28_v1 }
   0xd   :  { %36 = vperm.xlu0 %653, %v31_v8   ;;  %421 = vmatpush.msrb.mxu1 %v29_v0 }
   0xe   :  { %364 = vmatpush.msrb.mxu0 %v27_v3  ;;  %480 = vmatpush.msrb.mxu2 %v29_v0 }
   0xf   :  { %422 = vmatpush.msrb.mxu1 %v28_v1  ;;  %539 = vmatpush.msrb.mxu3 %v29_v0 }
  0x10   :  { %365 = vmatpush.msrb.mxu0 %v26_v5  ;;  %481 = vmatpush.msrb.mxu2 %v28_v1 }
  0x11   :  { %423 = vmatpush.msrb.mxu1 %v27_v3  ;;  %540 = vmatpush.msrb.mxu3 %v28_v1 }
  0x12   :  { %482 = vmatpush.msrb.mxu2 %v27_v3  ;;  %43 = vperm.xlu2 %654, %v38_v30  }
  0x13   :  { %424 = vmatpush.msrb.mxu1 %v26_v5  ;;  %541 = vmatpush.msrb.mxu3 %v27_v3 }
  0x14   :  { %483 = vmatpush.msrb.mxu2 %v26_v5 }
  0x15   :  { %542 = vmatpush.msrb.mxu3 %v26_v5 }
  0x6c   :  { %v44_v39 = vpop.permute.xlu2 %43 }
  0x6d   :  { %v91_v40 = vmul.f32 %v810_v9, %v44_v39 }
  0x6f   :  { %v102_v41 = vadd.f32 %v815_v11, %v91_v40 }
  0x7f   :  { %v37_v10 = vpop.permute.xlu0 %36 }
  0x80   :  { %v90_v12 = vmul.f32 %v810_v9, %v37_v10 }
  0x82   :  { %v101_v13 = vadd.f32 %v815_v11, %v90_v12 }
  0x86   :  { %v130_v14 = vpop.f32.mrf.mxu0 }
  0x87   :  { %v133_v15 = vadd.f32 %v130_v14, %v101_v13 }
  0x89   :  { %v632_v16 = vmul.f32 -1.442695, %v133_v15 }
  0x8b   :  { %659 = vpow2.f32 %v632_v16 }
  0x91   :  { %v660_v17 = vpop.eup %659 }
  0x92   :  { %v138_v18 = vadd.f32 1.0, %v660_v17 }
  0x94   :  { %661 = vrcp.f32 %v138_v18  ;;  %v150_v22 = vand.u32 2147483648, %v138_v18  ;;  %v148_v24 = vand.u32 2147483647, %v138_v18  ;;  %vm144_vm1 = vweird.f32 %v138_v18 }
  0x95   :  { %663 = vtanh.f32 %v133_v15 }
  0x96   :  { %v151_v26 = vor.u32 1.1754944e-38, %v150_v22  ;;  %vm149_vm3 = vcmp.eq.f32.partialorder %v148_v24, 8.507059e+37  ;;  %v52_v24 = vperm.slane %v804_v6, 3 }
  0x9a   :  { %v662_v19 = vpop.eup %661 }
  0x9b   :  { %v140_v20 = vmul.f32 %v662_v19, %v138_v18  ;;  %vm145_vm0 = vweird.f32 %v662_v19  ;;  %v664_v31 = vpop.eup %663 }
  0x9c   :  { %vm146_vm2 = vmor %vm144_vm1, %vm145_vm0 }
  0x9d   :  { %v141_v21 = vsub.f32 1.0, %v140_v20 }
  0x9f   :  { %v142_v23 = vmul.f32 %v662_v19, %v141_v21 }
  0xa1   :  { %v143_v25 = vadd.f32 %v662_v19, %v142_v23 }
  0xa3   :  { %v147_v27 = vsel %vm146_vm2, %v662_v19, %v143_v25 }
  0xa4   :  { %v152_v28 = vsel %vm149_vm3, %v151_v26, %v147_v27 }
  0xa5   :  { %155 = vrot.lane.b32.xlu0 %v152_v28, %s750_s1  ;;  %v159_v29 = vmul.f32 0.0, %v152_v28 }
  0xa7   :  { %161 = vrot.lane.b32.xlu1 %v159_v29, %s751_s3 }
  0xaf   :  { %166 = vrot.lane.b32.xlu1 %v152_v28, %s752_s9 }
 0x117   :  { %v156_v32 = vpop.permute.xlu0 %155 }
 0x118   :  { %v158_v33 = vmul.f32 %v664_v31, %v156_v32 }
 0x119   :  { %v162_v34 = vpop.permute.xlu1 %161 }
 0x11a   :  { %v164_v35 = vadd.f32 %v162_v34, %v158_v33 }
 0x11c   :  { %665 = vtanh.f32 %v164_v35 }
 0x121   :  { %v167_v36 = vpop.permute.xlu1 %166 }
 0x122   :  { %v666_v37 = vpop.eup %665 }
 0x123   :  { %v169_v38 = vmul.f32 %v666_v37, %v167_v36 }
 0x125   :  { %633 = vmatmul.msk.f32.vlgmr.msra.gmra.mxu1 %vm109_vm4, %v169_v38 }
 0x1a2   :  { %v190_v42 = vpop.f32.mrf.mxu1 }
 0x1a3   :  { %v193_v43 = vadd.f32 %v190_v42, %v102_v41 }
 0x1a5   :  { %v634_v44 = vmul.f32 -1.442695, %v193_v43 }
 0x1a7   :  { %667 = vpow2.f32 %v634_v44 }
 0x1ad   :  { %v668_v45 = vpop.eup %667 }
 0x1ae   :  { %v198_v46 = vadd.f32 1.0, %v668_v45 }
 0x1b0   :  { %669 = vrcp.f32 %v198_v46  ;;  %v210_v50 = vand.u32 2147483648, %v198_v46  ;;  %v208_v52 = vand.u32 2147483647, %v198_v46  ;;  %vm204_vm6 = vweird.f32 %v198_v46 }
 0x1b1   :  { %671 = vtanh.f32 %v193_v43 }
 0x1b2   :  { %v211_v54 = vor.u32 1.1754944e-38, %v210_v50  ;;  %vm209_vm8 = vcmp.eq.f32.partialorder %v208_v52, 8.507059e+37  ;;  %v59_v52 = vperm.slane %v804_v6, 4 }
 0x1b6   :  { %v670_v47 = vpop.eup %669 }
 0x1b7   :  { %v200_v48 = vmul.f32 %v670_v47, %v198_v46  ;;  %vm205_vm5 = vweird.f32 %v670_v47  ;;  %v672_v59 = vpop.eup %671 }
 0x1b8   :  { %vm206_vm7 = vmor %vm204_vm6, %vm205_vm5 }
 0x1b9   :  { %v201_v49 = vsub.f32 1.0, %v200_v48 }
 0x1bb   :  { %v202_v51 = vmul.f32 %v670_v47, %v201_v49 }
 0x1bd   :  { %v203_v53 = vadd.f32 %v670_v47, %v202_v51 }
 0x1bf   :  { %v207_v55 = vsel %vm206_vm7, %v670_v47, %v203_v53 }
 0x1c0   :  { %v212_v56 = vsel %vm209_vm8, %v211_v54, %v207_v55 }
 0x1c1   :  { %225 = vrot.lane.b32.xlu1 %v212_v56, %s752_s9  ;;  %219 = vrot.lane.b32.xlu0 %v212_v56, %s751_s3 }
 0x1c2   :  { %215 = vrot.lane.b32.xlu2 %v212_v56, %s750_s1 }
 0x1ca   :  { %50 = vperm.xlu2 %654, %v45_v57  }
 0x21c   :  { %v216_v58 = vpop.permute.xlu2 %215 }
 0x21d   :  { %v218_v61 = vmul.f32 %v672_v59, %v216_v58 }
 0x224   :  { %v51_v3 = vpop.permute.xlu2 %50 }
 0x225   :  { %v92_v4 = vmul.f32 %v810_v9, %v51_v3 }
 0x227   :  { %v103_v5 = vadd.f32 %v815_v11, %v92_v4 }
 0x233   :  { %v220_v60 = vpop.permute.xlu0 %219  ;;  %v226_v1 = vpop.permute.xlu1 %225 }
 0x234   :  { %v222_v62 = vmul.f32 %v220_v60, %v164_v35 }
 0x236   :  { %v223_v63 = vadd.f32 %v222_v62, %v218_v61 }
 0x238   :  { %673 = vtanh.f32 %v223_v63 }
 0x23e   :  { %v674_v0 = vpop.eup %673 }
 0x23f   :  { %v228_v2 = vmul.f32 %v674_v0, %v226_v1 }
 0x241   :  { %635 = vmatmul.msk.f32.vlgmr.msra.gmra.mxu2 %vm109_vm4, %v228_v2 }
 0x2c4   :  { %v249_v7 = vpop.f32.mrf.mxu2 }
 0x2c5   :  { %v252_v8 = vadd.f32 %v249_v7, %v103_v5 }
 0x2c7   :  { %v636_v10 = vmul.f32 -1.442695, %v252_v8 }
 0x2c9   :  { %675 = vpow2.f32 %v636_v10 }
 0x2cf   :  { %v676_v12 = vpop.eup %675 }
 0x2d0   :  { %v257_v13 = vadd.f32 1.0, %v676_v12 }
 0x2d2   :  { %677 = vrcp.f32 %v257_v13  ;;  %v269_v17 = vand.u32 2147483648, %v257_v13  ;;  %v267_v19 = vand.u32 2147483647, %v257_v13  ;;  %vm263_vm10 = vweird.f32 %v257_v13 }
 0x2d3   :  { %679 = vtanh.f32 %v252_v8 }
 0x2d4   :  { %v270_v21 = vor.u32 1.1754944e-38, %v269_v17  ;;  %vm268_vm12 = vcmp.eq.f32.partialorder %v267_v19, 8.507059e+37  ;;  %v66_v19 = vperm.slane %v804_v6, 5 }
 0x2d8   :  { %v678_v14 = vpop.eup %677 }
 0x2d9   :  { %v259_v15 = vmul.f32 %v678_v14, %v257_v13  ;;  %vm264_vm9 = vweird.f32 %v678_v14  ;;  %v680_v26 = vpop.eup %679 }
 0x2da   :  { %vm265_vm11 = vmor %vm263_vm10, %vm264_vm9 }
 0x2db   :  { %v260_v16 = vsub.f32 1.0, %v259_v15 }
 0x2dd   :  { %v261_v18 = vmul.f32 %v678_v14, %v260_v16 }
 0x2df   :  { %v262_v20 = vadd.f32 %v678_v14, %v261_v18 }
 0x2e1   :  { %v266_v22 = vsel %vm265_vm11, %v678_v14, %v262_v20 }
 0x2e2   :  { %v271_v23 = vsel %vm268_vm12, %v270_v21, %v266_v22 }
 0x2e3   :  { %284 = vrot.lane.b32.xlu2 %v271_v23, %s752_s9  ;;  %278 = vrot.lane.b32.xlu1 %v271_v23, %s751_s3 }
 0x2e4   :  { %274 = vrot.lane.b32.xlu0 %v271_v23, %s750_s1 }
 0x2ec   :  { %57 = vperm.xlu0 %653, %v52_v24  }
 0x33d   :  { %v285_v32 = vpop.permute.xlu2 %284 }
 0x355   :  { %v279_v25 = vpop.permute.xlu1 %278 }
 0x356   :  { %v281_v27 = vmul.f32 %v279_v25, %v223_v63  ;;  %v275_v28 = vpop.permute.xlu0 %274 }
 0x357   :  { %v277_v29 = vmul.f32 %v680_v26, %v275_v28 }
 0x359   :  { %v282_v30 = vadd.f32 %v281_v27, %v277_v29 }
 0x35b   :  { %681 = vtanh.f32 %v282_v30 }
 0x35e   :  { %v58_v34 = vpop.permute.xlu0 %57 }
 0x35f   :  { %v93_v35 = vmul.f32 %v810_v9, %v58_v34 }
 0x361   :  { %v682_v31 = vpop.eup %681  ;;  %v104_v36 = vadd.f32 %v815_v11, %v93_v35 }
 0x362   :  { %v287_v33 = vmul.f32 %v682_v31, %v285_v32 }
 0x364   :  { %637 = vmatmul.msk.f32.vlgmr.msra.gmra.mxu3 %vm109_vm4, %v287_v33 }
 0x3e7   :  { %v308_v37 = vpop.f32.mrf.mxu3 }
 0x3e8   :  { %v311_v38 = vadd.f32 %v308_v37, %v104_v36 }
 0x3ea   :  { %v638_v39 = vmul.f32 -1.442695, %v311_v38 }
 0x3ec   :  { %683 = vpow2.f32 %v638_v39 }
 0x3f2   :  { %v684_v40 = vpop.eup %683 }
 0x3f3   :  { %v316_v41 = vadd.f32 1.0, %v684_v40 }
 0x3f5   :  { %685 = vrcp.f32 %v316_v41  ;;  %v328_v45 = vand.u32 2147483648, %v316_v41  ;;  %v326_v47 = vand.u32 2147483647, %v316_v41  ;;  %vm322_vm14 = vweird.f32 %v316_v41 }
 0x3f6   :  { %687 = vtanh.f32 %v311_v38 }
 0x3f7   :  { %v329_v49 = vor.u32 1.1754944e-38, %v328_v45  ;;  %vm327_vm0 = vcmp.eq.f32.partialorder %v326_v47, 8.507059e+37  ;;  %v73_v47 = vperm.slane %v804_v6, 6 }
 0x3fb   :  { %v686_v42 = vpop.eup %685 }
 0x3fc   :  { %v318_v43 = vmul.f32 %v686_v42, %v316_v41  ;;  %vm323_vm13 = vweird.f32 %v686_v42  ;;  %v688_v54 = vpop.eup %687 }
 0x3fd   :  { %vm324_vm15 = vmor %vm322_vm14, %vm323_vm13 }
 0x3fe   :  { %v319_v44 = vsub.f32 1.0, %v318_v43 }
 0x400   :  { %v320_v46 = vmul.f32 %v686_v42, %v319_v44 }
 0x402   :  { %v321_v48 = vadd.f32 %v686_v42, %v320_v46 }
 0x404   :  { %v325_v50 = vsel %vm324_vm15, %v686_v42, %v321_v48 }
 0x405   :  { %v330_v51 = vsel %vm327_vm0, %v329_v49, %v325_v50 }
 0x406   :  { %343 = vrot.lane.b32.xlu0 %v330_v51, %s752_s9  ;;  %337 = vrot.lane.b32.xlu2 %v330_v51, %s751_s3 }
 0x407   :  { %333 = vrot.lane.b32.xlu1 %v330_v51, %s750_s1 }
 0x40f   :  { %64 = vperm.xlu1 %655, %v59_v52  }
 0x460   :  { %v338_v53 = vpop.permute.xlu2 %337 }
 0x461   :  { %v340_v56 = vmul.f32 %v338_v53, %v282_v30 }
 0x478   :  { %v344_v60 = vpop.permute.xlu0 %343 }
 0x479   :  { %v334_v55 = vpop.permute.xlu1 %333 }
 0x47a   :  { %v336_v57 = vmul.f32 %v688_v54, %v334_v55 }
 0x47c   :  { %v341_v58 = vadd.f32 %v340_v56, %v336_v57 }
 0x47e   :  { %689 = vtanh.f32 %v341_v58 }
 0x481   :  { %v65_v62 = vpop.permute.xlu1 %64 }
 0x482   :  { %v94_v63 = vmul.f32 %v810_v9, %v65_v62 }
 0x484   :  { %v690_v59 = vpop.eup %689  ;;  %v105_v0 = vadd.f32 %v815_v11, %v94_v63 }
 0x485   :  { %v346_v61 = vmul.f32 %v690_v59, %v344_v60 }
 0x487   :  { %639 = vmatmul.msk.f32.vlgmr.msrb.gmra.mxu0 %vm109_vm4, %v346_v61 }
 0x504   :  { %v367_v1 = vpop.f32.mrf.mxu0 }
 0x505   :  { %v370_v2 = vadd.f32 %v367_v1, %v105_v0 }
 0x507   :  { %v640_v3 = vmul.f32 -1.442695, %v370_v2 }
 0x509   :  { %691 = vpow2.f32 %v640_v3 }
 0x50f   :  { %v692_v4 = vpop.eup %691 }
 0x510   :  { %v375_v5 = vadd.f32 1.0, %v692_v4 }
 0x512   :  { %693 = vrcp.f32 %v375_v5  ;;  %v387_v12 = vand.u32 2147483648, %v375_v5  ;;  %v385_v14 = vand.u32 2147483647, %v375_v5  ;;  %vm381_vm2 = vweird.f32 %v375_v5 }
 0x513   :  { %695 = vtanh.f32 %v370_v2 }
 0x514   :  { %v388_v16 = vor.u32 1.1754944e-38, %v387_v12  ;;  %vm386_vm5 = vcmp.eq.f32.partialorder %v385_v14, 8.507059e+37  ;;  %v80_v14 = vperm.slane %v804_v6, 7 }
 0x518   :  { %v694_v7 = vpop.eup %693 }
 0x519   :  { %v377_v8 = vmul.f32 %v694_v7, %v375_v5  ;;  %vm382_vm1 = vweird.f32 %v694_v7  ;;  %v696_v21 = vpop.eup %695 }
 0x51a   :  { %vm383_vm3 = vmor %vm381_vm2, %vm382_vm1  ;;  %vm614_vm2 = vcmask 80896  }
 0x51b   :  { %v378_v10 = vsub.f32 1.0, %v377_v8 }
 0x51d   :  { %v379_v13 = vmul.f32 %v694_v7, %v378_v10 }
 0x51f   :  { %v380_v15 = vadd.f32 %v694_v7, %v379_v13 }
 0x521   :  { %v384_v17 = vsel %vm383_vm3, %v694_v7, %v380_v15 }
 0x522   :  { %v389_v18 = vsel %vm386_vm5, %v388_v16, %v384_v17 }
 0x523   :  { %402 = vrot.lane.b32.xlu1 %v389_v18, %s752_s9  ;;  %396 = vrot.lane.b32.xlu0 %v389_v18, %s751_s3 }
 0x524   :  { %392 = vrot.lane.b32.xlu2 %v389_v18, %s750_s1 }
 0x52c   :  { %71 = vperm.xlu2 %654, %v66_v19  }
 0x57e   :  { %v393_v20 = vpop.permute.xlu2 %392 }
 0x57f   :  { %v395_v23 = vmul.f32 %v696_v21, %v393_v20 }
 0x586   :  { %v72_v29 = vpop.permute.xlu2 %71 }
 0x587   :  { %v95_v30 = vmul.f32 %v810_v9, %v72_v29 }
 0x589   :  { %v106_v31 = vadd.f32 %v815_v11, %v95_v30 }
 0x595   :  { %v397_v22 = vpop.permute.xlu0 %396  ;;  %v403_v27 = vpop.permute.xlu1 %402 }
 0x596   :  { %v399_v24 = vmul.f32 %v397_v22, %v341_v58 }
 0x598   :  { %v400_v25 = vadd.f32 %v399_v24, %v395_v23 }
 0x59a   :  { %697 = vtanh.f32 %v400_v25 }
 0x5a0   :  { %v698_v26 = vpop.eup %697 }
 0x5a1   :  { %v405_v28 = vmul.f32 %v698_v26, %v403_v27 }
 0x5a3   :  { %641 = vmatmul.msk.f32.vlgmr.msrb.gmra.mxu1 %vm109_vm4, %v405_v28 }
 0x620   :  { %v426_v32 = vpop.f32.mrf.mxu1 }
 0x621   :  { %v429_v33 = vadd.f32 %v426_v32, %v106_v31 }
 0x623   :  { %v642_v34 = vmul.f32 -1.442695, %v429_v33 }
 0x625   :  { %699 = vpow2.f32 %v642_v34 }
 0x62b   :  { %v700_v35 = vpop.eup %699 }
 0x62c   :  { %v434_v36 = vadd.f32 1.0, %v700_v35 }
 0x62e   :  { %701 = vrcp.f32 %v434_v36  ;;  %v446_v40 = vand.u32 2147483648, %v434_v36  ;;  %v444_v42 = vand.u32 2147483647, %v434_v36  ;;  %vm440_vm7 = vweird.f32 %v434_v36 }
 0x62f   :  { %703 = vtanh.f32 %v429_v33 }
 0x630   :  { %v447_v44 = vor.u32 1.1754944e-38, %v446_v40  ;;  %vm445_vm9 = vcmp.eq.f32.partialorder %v444_v42, 8.507059e+37  ;;  %v585_v40 = vld [vmem:[%s894_s4 + $0x10] sm:$0xff]  ;;  %v583_v42 = vld [vmem:[%s894_s4] sm:$0xff] }
 0x634   :  { %v702_v37 = vpop.eup %701 }
 0x635   :  { %v436_v38 = vmul.f32 %v702_v37, %v434_v36  ;;  %vm441_vm6 = vweird.f32 %v702_v37  ;;  %v704_v49 = vpop.eup %703 }
 0x636   :  { %vm442_vm8 = vmor %vm440_vm7, %vm441_vm6 }
 0x637   :  { %v437_v39 = vsub.f32 1.0, %v436_v38 }
 0x639   :  { %v438_v41 = vmul.f32 %v702_v37, %v437_v39  ;;  %v586_v39 = vld [vmem:[%s894_s4 + $0x18] sm:$0xff] }
 0x63a   :  { %606 = vmatpush.msra.mxu0 %v586_v39 }
 0x63b   :  { %v439_v43 = vadd.f32 %v702_v37, %v438_v41  ;;  %v584_v41 = vld [vmem:[%s894_s4 + $0x8] sm:$0xff]  ;;  %s621_s4 = sshll.u32 %s753_s20, 4  ;;  %s622_s4 = int_to_ptr.vmem [resolvable:$true] %s621_s4 }
 0x63c   :  { %607 = vmatpush.msra.mxu0 %v585_v40 }
 0x63d   :  { %v443_v45 = vsel %vm442_vm8, %v702_v37, %v439_v43 }
 0x63e   :  { %v448_v46 = vsel %vm445_vm9, %v447_v44, %v443_v45  ;;  %608 = vmatpush.msra.mxu0 %v584_v41 }
 0x63f   :  { %461 = vrot.lane.b32.xlu2 %v448_v46, %s752_s9  ;;  %455 = vrot.lane.b32.xlu1 %v448_v46, %s751_s3 }
 0x640   :  { %451 = vrot.lane.b32.xlu0 %v448_v46, %s750_s1  ;;  %609 = vmatpush.msra.mxu0 %v583_v42 }
 0x648   :  { %78 = vperm.xlu0 %653, %v73_v47  }
 0x699   :  { %v462_v55 = vpop.permute.xlu2 %461 }
 0x6b1   :  { %v456_v48 = vpop.permute.xlu1 %455 }
 0x6b2   :  { %v458_v50 = vmul.f32 %v456_v48, %v400_v25  ;;  %v452_v51 = vpop.permute.xlu0 %451 }
 0x6b3   :  { %v454_v52 = vmul.f32 %v704_v49, %v452_v51 }
 0x6b5   :  { %v459_v53 = vadd.f32 %v458_v50, %v454_v52  ;;  %v658_v52 = vld [vmem:[%s895_s5] ss:$0 sm:$0xff] }
 0x6b7   :  { %705 = vtanh.f32 %v459_v53 }
 0x6ba   :  { %v79_v57 = vpop.permute.xlu0 %78 }
 0x6bb   :  { %v96_v58 = vmul.f32 %v810_v9, %v79_v57 }
 0x6bd   :  { %v706_v54 = vpop.eup %705  ;;  %v107_v59 = vadd.f32 %v815_v11, %v96_v58 }
 0x6be   :  { %v464_v56 = vmul.f32 %v706_v54, %v462_v55 }
 0x6c0   :  { %643 = vmatmul.msk.f32.vlgmr.msrb.gmra.mxu2 %vm109_vm4, %v464_v56 }
 0x743   :  { %v485_v60 = vpop.f32.mrf.mxu2 }
 0x744   :  { %v488_v61 = vadd.f32 %v485_v60, %v107_v59 }
 0x746   :  { %v644_v62 = vmul.f32 -1.442695, %v488_v61 }
 0x748   :  { %707 = vpow2.f32 %v644_v62 }
 0x74e   :  { %v708_v63 = vpop.eup %707 }
 0x74f   :  { %v493_v0 = vadd.f32 1.0, %v708_v63 }
 0x751   :  { %709 = vrcp.f32 %v493_v0  ;;  %v505_v4 = vand.u32 2147483648, %v493_v0  ;;  %v503_v7 = vand.u32 2147483647, %v493_v0  ;;  %vm499_vm11 = vweird.f32 %v493_v0 }
 0x752   :  { %711 = vtanh.f32 %v488_v61 }
 0x753   :  { %v506_v10 = vor.u32 1.1754944e-38, %v505_v4  ;;  %vm504_vm13 = vcmp.eq.f32.partialorder %v503_v7, 8.507059e+37 }
 0x757   :  { %v710_v1 = vpop.eup %709 }
 0x758   :  { %v495_v2 = vmul.f32 %v710_v1, %v493_v0  ;;  %vm500_vm10 = vweird.f32 %v710_v1  ;;  %v712_v16 = vpop.eup %711 }
 0x759   :  { %vm501_vm12 = vmor %vm499_vm11, %vm500_vm10 }
 0x75a   :  { %v496_v3 = vsub.f32 1.0, %v495_v2 }
 0x75c   :  { %v497_v5 = vmul.f32 %v710_v1, %v496_v3 }
 0x75e   :  { %v498_v8 = vadd.f32 %v710_v1, %v497_v5 }
 0x760   :  { %v502_v12 = vsel %vm501_vm12, %v710_v1, %v498_v8 }
 0x761   :  { %v507_v13 = vsel %vm504_vm13, %v506_v10, %v502_v12 }
 0x762   :  { %520 = vrot.lane.b32.xlu0 %v507_v13, %s752_s9  ;;  %514 = vrot.lane.b32.xlu2 %v507_v13, %s751_s3 }
 0x763   :  { %510 = vrot.lane.b32.xlu1 %v507_v13, %s750_s1 }
 0x76b   :  { %85 = vperm.xlu1 %655, %v80_v14  }
 0x7bc   :  { %v515_v15 = vpop.permute.xlu2 %514 }
 0x7bd   :  { %v517_v18 = vmul.f32 %v515_v15, %v459_v53 }
 0x7d4   :  { %v521_v22 = vpop.permute.xlu0 %520 }
 0x7d5   :  { %v511_v17 = vpop.permute.xlu1 %510 }
 0x7d6   :  { %v513_v19 = vmul.f32 %v712_v16, %v511_v17 }
 0x7d8   :  { %v518_v20 = vadd.f32 %v517_v18, %v513_v19 }
 0x7da   :  { %713 = vtanh.f32 %v518_v20 }
 0x7dd   :  { %v86_v24 = vpop.permute.xlu1 %85 }
 0x7de   :  { %v97_v25 = vmul.f32 %v810_v9, %v86_v24 }
 0x7e0   :  { %v714_v21 = vpop.eup %713  ;;  %v108_v26 = vadd.f32 %v815_v11, %v97_v25 }
 0x7e1   :  { %v523_v23 = vmul.f32 %v714_v21, %v521_v22 }
 0x7e3   :  { %645 = vmatmul.msk.f32.vlgmr.msrb.gmra.mxu3 %vm109_vm4, %v523_v23 }
 0x866   :  { %v544_v6 = vpop.f32.mrf.mxu3 }
 0x867   :  { %v547_v27 = vadd.f32 %v544_v6, %v108_v26 }
 0x869   :  { %v646_v28 = vmul.f32 -1.442695, %v547_v27 }
 0x86b   :  { %715 = vpow2.f32 %v646_v28 }
 0x871   :  { %v716_v29 = vpop.eup %715 }
 0x872   :  { %v552_v30 = vadd.f32 1.0, %v716_v29 }
 0x874   :  { %717 = vrcp.f32 %v552_v30  ;;  %v564_v34 = vand.u32 2147483648, %v552_v30  ;;  %v562_v36 = vand.u32 2147483647, %v552_v30  ;;  %vm558_vm15 = vweird.f32 %v552_v30 }
 0x875   :  { %719 = vtanh.f32 %v547_v27 }
 0x876   :  { %v565_v9 = vor.u32 1.1754944e-38, %v564_v34  ;;  %vm563_vm1 = vcmp.eq.f32.partialorder %v562_v36, 8.507059e+37 }
 0x87a   :  { %v718_v31 = vpop.eup %717 }
 0x87b   :  { %v554_v32 = vmul.f32 %v718_v31, %v552_v30  ;;  %vm559_vm14 = vweird.f32 %v718_v31  ;;  %v720_v44 = vpop.eup %719 }
 0x87c   :  { %vm560_vm0 = vmor %vm558_vm15, %vm559_vm14 }
 0x87d   :  { %v555_v33 = vsub.f32 1.0, %v554_v32 }
 0x87f   :  { %v556_v35 = vmul.f32 %v718_v31, %v555_v33 }
 0x881   :  { %v557_v37 = vadd.f32 %v718_v31, %v556_v35 }
 0x883   :  { %v561_v38 = vsel %vm560_vm0, %v718_v31, %v557_v37 }
 0x884   :  { %v566_v11 = vsel %vm563_vm1, %v565_v9, %v561_v38 }
 0x885   :  { %579 = vrot.lane.b32.xlu1 %v566_v11, %s752_s9  ;;  %573 = vrot.lane.b32.xlu0 %v566_v11, %s751_s3 }
 0x886   :  { %569 = vrot.lane.b32.xlu2 %v566_v11, %s750_s1 }
 0x8e0   :  { %v570_v43 = vpop.permute.xlu2 %569 }
 0x8e1   :  { %v572_v46 = vmul.f32 %v720_v44, %v570_v43 }
 0x8f7   :  { %v574_v45 = vpop.permute.xlu0 %573  ;;  %v580_v50 = vpop.permute.xlu1 %579 }
 0x8f8   :  { %v576_v47 = vmul.f32 %v574_v45, %v518_v20 }
 0x8fa   :  { %v577_v48 = vadd.f32 %v576_v47, %v572_v46 }
 0x8fc   :  { %721 = vtanh.f32 %v577_v48 }
 0x902   :  { %v722_v49 = vpop.eup %721 }
 0x903   :  { %v582_v51 = vmul.f32 %v722_v49, %v580_v50 }
 0x905   :  { %647 = vmatmul.msk.f32.vlgmr.msra.gmra.mxu0 %vm109_vm4, %v582_v51 }
 0x982   :  { %v611_v53 = vpop.f32.mrf.mxu0 }
 0x983   :  { %v612_v54 = vadd.f32 %v658_v52, %v611_v53 }
 0x985   :  { %615 = vst.msk [vmem:[#allocation2] sm:$0xff] %vm614_vm2, %v612_v54 }
 0x986   :  { %626 = dma.vmem_to_hbm [thread:$0]  %s622_s4, 128, %s624_s23, [#allocation3]  }
 0x987   :  { %747 = dma.done.wait [#allocation3], 128  }
 0x988   :  { %748 = vsyncadd [#allocation3], 4294967168 }
 0x989   :  { %631 = vsyncpa [#allocation3], 1 }

</bundles_post_ra>
